<compile_context>
chip_gen: v5e
topology: v5e:2x2
jax: 0.10.0
libtpu: 0.0.40
codegen_flags: <defaults>
</compile_context>

<pallas_src>
import functools

import jax
import jax.numpy as jnp
from jax.experimental import pallas as pl
from jax.experimental.pallas import tpu as pltpu


def _round_up(x, m):
    return (x + m - 1) // m * m


def _embed_kernel(x_ref, w_ref, b_ref, o_ref, acc_ref, *,
                  inv_s, s_true, s_tile, mask_spatial):
    # x_ref:   [b_tile, C, s_tile]  NCHW-native: spatial on lanes, C on sublanes
    # w_ref:   [C, E_pad]           grid-resident, single-buffered
    # b_ref:   [1, E_pad]           grid-resident, single-buffered
    # o_ref:   [b_tile, E_pad]      lane-dense output tile
    # acc_ref: [b_tile, C] f32 scratch (running spatial sum)
    k = pl.program_id(1)

    @pl.when(k == 0)
    def _init():
        acc_ref[...] = jnp.zeros_like(acc_ref)

    xv = x_ref[...]
    if mask_spatial:
        # Last spatial tile may overhang the true H*W: zero the overhang lanes.
        # (Static Python flag -> no cost when the spatial tiling is exact.)
        col = jax.lax.broadcasted_iota(jnp.int32, xv.shape, 2) + k * s_tile
        xv = jnp.where(col < s_true, xv, jnp.zeros((), xv.dtype))

    # Partial spatial sum for this tile (lane reduce -> XLU, which is idle here).
    acc_ref[...] += jnp.sum(xv, axis=-1, dtype=jnp.float32)

    @pl.when(k == pl.num_programs(1) - 1)
    def _finalize():
        pooled = acc_ref[...] * inv_s                 # mean over the FULL H*W
        w = w_ref[...]
        if w.dtype != jnp.float32:                    # bf16 weights: native MXU path
            pooled = pooled.astype(w.dtype)
        emb = jnp.dot(pooled, w, preferred_element_type=jnp.float32)
        o_ref[...] = (emb + b_ref[...].astype(jnp.float32)).astype(o_ref.dtype)


def base_model_forward(x, w, b):
    """x: [B, C, H, W]; w: [C, E]; b: [E]. Returns [B, E] float32."""
    B, C, H, W = x.shape
    Cw, E = w.shape
    assert Cw == C
    S = H * W

    # NCHW is contiguous over (H, W): this reshape is a free view, no HBM copy.
    x_flat = x.reshape(B, C, S)

    # Lane-dense (unmasked-store) output width; weight/bias pads are tiny.
    E_pad = _round_up(E, 128)
    w_p = w if E_pad == E else jnp.pad(w, ((0, 0), (0, E_pad - E)))
    b_p = (b if E_pad == E else jnp.pad(b, (0, E_pad - E))).reshape(1, E_pad)

    # ---- generation-aware VMEM budget --------------------------------------
    try:
        vmem_cap = int(pltpu.get_tpu_info().vmem_capacity_bytes)
    except Exception:
        vmem_cap = 64 * 1024 * 1024                 # conservative (v7x per-TC)
    budget = min(int(vmem_cap * 0.75), 100 * 1024 * 1024)

    x_itemsize = jnp.dtype(x.dtype).itemsize
    w_itemsize = jnp.dtype(w_p.dtype).itemsize

    # Batch tile: full B when tiny (block == full dim -> no padding, no OOB);
    # otherwise 8 so the parallel axis has >= 2 tiles (v7x megacore) for B > 8.
    b_tile = B if B <= 8 else 8
    B_pad = _round_up(B, b_tile)

    # Fixed VMEM residents (independent of the spatial tile size).
    fixed_bytes = (C * E_pad * w_itemsize           # w, single-buffered
                   + 8 * E_pad * 4                  # b (sublane-padded)
                   + 2 * b_tile * E_pad * 4         # out, double-buffered
                   + b_tile * C * 4)                # f32 accumulator
    # TODO(synk): for extreme C*E (w alone exceeding the VMEM budget) the
    # projection would need an extra E-blocking grid axis; not needed for
    # realistic embedding heads.

    # Spatial tile: multiple of 128 (or the full extent when S <= 128), sized
    # to the remaining double-buffered budget.
    per_s_bytes = 2 * b_tile * C * x_itemsize
    s_budget = max(budget - fixed_bytes, 0) // per_s_bytes
    if S <= 128:
        s_tile = S
    else:
        s_tile = max(128, min(_round_up(S, 128), (s_budget // 128) * 128))

    n_s_steps = pl.cdiv(S, s_tile)
    mask_spatial = (S % s_tile) != 0

    x_tile_bytes = b_tile * C * s_tile * x_itemsize
    # Very small tiles + several reduction steps: deepen buffering to hide DMA
    # latency behind the short per-step compute; otherwise keep the default 2.
    n_x_buf = 3 if (x_tile_bytes < 256 * 1024 and n_s_steps > 2) else 2

    vmem_limit = min(max(fixed_bytes + n_x_buf * x_tile_bytes + (2 << 20),
                         16 * 1024 * 1024), vmem_cap)

    grid = (B_pad // b_tile, n_s_steps)             # reduction axis last

    x_spec_kwargs = {}
    if n_x_buf != 2:
        x_spec_kwargs["pipeline_mode"] = pl.Buffered(n_x_buf)
    in_specs = [
        # Batch remainder tiles (B not a multiple of b_tile) read past B; the
        # garbage only lands in output rows >= B, which are sliced off below.
        pl.BlockSpec((b_tile, C, s_tile), lambda i, k: (i, 0, k),
                     **x_spec_kwargs),
        # Grid-invariant weight/bias: single buffer (no useless second copy).
        pl.BlockSpec((C, E_pad), lambda i, k: (0, 0),
                     pipeline_mode=pl.Buffered(1)),
        pl.BlockSpec((1, E_pad), lambda i, k: (0, 0),
                     pipeline_mode=pl.Buffered(1)),
    ]

    kernel = functools.partial(_embed_kernel, inv_s=1.0 / float(S),
                               s_true=S, s_tile=s_tile,
                               mask_spatial=mask_spatial)

    out = pl.pallas_call(
        kernel,
        out_shape=jax.ShapeDtypeStruct((B_pad, E_pad), jnp.float32),
        grid_spec=pltpu.PrefetchScalarGridSpec(
            num_scalar_prefetch=0,
            grid=grid,
            in_specs=in_specs,
            out_specs=pl.BlockSpec((b_tile, E_pad), lambda i, k: (i, 0)),
            scratch_shapes=[pltpu.VMEM((b_tile, C), jnp.float32)],
        ),
        compiler_params=pltpu.CompilerParams(
            dimension_semantics=("parallel", "arbitrary"),
            vmem_limit_bytes=int(vmem_limit),
        ),
    )(x_flat, w_p, b_p)

    if B_pad != B or E_pad != E:
        out = out[:B, :E]
    return out


if __name__ == "__main__":
    # Config mirrors BaseModel: embedding_dim default = 128.
    config = {"embedding_dim": 128}
    embedding_dim = config.get("embedding_dim", 128)

    B, C, H, W = 2, 4, 16, 16

    key = jax.random.PRNGKey(0)
    kx, kw, kb = jax.random.split(key, 3)
    x = jax.random.normal(kx, (B, C, H, W), dtype=jnp.float32)
    # Deterministic in-script parameter init (no checkpoint loading).
    w = (jax.random.normal(kw, (C, embedding_dim), dtype=jnp.float32)
         * (1.0 / jnp.sqrt(C)))
    b = jnp.zeros((embedding_dim,), dtype=jnp.float32)

    out = base_model_forward(x, w, b)
    jax.block_until_ready(out)

    # Reference check in plain JAX (same math: global average pool + linear).
    ref = jnp.mean(x.reshape(B, C, H * W), axis=-1) @ w + b
    assert out.shape == (B, embedding_dim)
    assert jnp.allclose(out, ref, atol=1e-5, rtol=1e-5)

    print("KERNEL_OK")
</pallas_src>

<mosaic_0001>
module attributes {stable_mosaic.version = 11 : i64} {
  func.func @_embed_kernel(%arg0: i32, %arg1: i32, %arg2: memref<2x4x256xf32, #tpu.memory_space<vmem>>, %arg3: memref<4x128xf32, #tpu.memory_space<vmem>>, %arg4: memref<1x128xf32, #tpu.memory_space<vmem>>, %arg5: memref<2x128xf32, #tpu.memory_space<vmem>>, %arg6: memref<2x4xf32, #tpu.memory_space<vmem>>) attributes {dimension_semantics = [#tpu.dimension_semantics<parallel>, #tpu.dimension_semantics<arbitrary>], iteration_bounds = array<i64: 1, 1>, scalar_prefetch = 0 : i64, scratch_operands = 1 : i64, tpu.core_type = #tpu.core_type<tc>, window_params = [{transform_indices = @transform_0, window_bounds = array<i64: 2, 4, 256>}, {pipeline_mode = #tpu.pipeline_mode<synchronous>, transform_indices = @transform_1, window_bounds = array<i64: 4, 128>}, {pipeline_mode = #tpu.pipeline_mode<synchronous>, transform_indices = @transform_2, window_bounds = array<i64: 1, 128>}, {transform_indices = @transform_3, window_bounds = array<i64: 2, 128>}]} {
    %c0_i32 = arith.constant 0 : i32
    %0 = arith.cmpi eq, %arg1, %c0_i32 : i32
    %1 = arith.extui %0 : i1 to i32
    %c0_i32_0 = arith.constant 0 : i32
    %2 = arith.cmpi ne, %1, %c0_i32_0 : i32
    scf.if %2 {
      %cst_9 = arith.constant 0.000000e+00 : f32
      %11 = vector.broadcast %cst_9 : f32 to vector<2x4xf32>
      %c0_10 = arith.constant 0 : index
      %c0_11 = arith.constant 0 : index
      %12 = vector.load %arg6[%c0_10, %c0_11] : memref<2x4xf32, #tpu.memory_space<vmem>>, vector<2x4xf32>
      tpu.vector_store %arg6[%c0_10, %c0_11], %11 {strides = array<i32>} : memref<2x4xf32, #tpu.memory_space<vmem>>, vector<2x4xf32>,
    } else {
    }
    %c0 = arith.constant 0 : index
    %c0_1 = arith.constant 0 : index
    %c0_2 = arith.constant 0 : index
    %3 = vector.load %arg2[%c0, %c0_1, %c0_2] : memref<2x4x256xf32, #tpu.memory_space<vmem>>, vector<2x4x256xf32>
    %c0_3 = arith.constant 0 : index
    %c0_4 = arith.constant 0 : index
    %4 = vector.load %arg6[%c0_3, %c0_4] : memref<2x4xf32, #tpu.memory_space<vmem>>, vector<2x4xf32>
    %cst = arith.constant dense<0.000000e+00> : vector<2x4xf32>
    %5 = vector.multi_reduction <add>, %3, %cst [2] : vector<2x4x256xf32> to vector<2x4xf32>
    %6 = arith.addf %4, %5 : vector<2x4xf32>
    %c0_5 = arith.constant 0 : index
    %c0_6 = arith.constant 0 : index
    %7 = vector.load %arg6[%c0_5, %c0_6] : memref<2x4xf32, #tpu.memory_space<vmem>>, vector<2x4xf32>
    tpu.vector_store %arg6[%c0_5, %c0_6], %6 {strides = array<i32>} : memref<2x4xf32, #tpu.memory_space<vmem>>, vector<2x4xf32>,
    %c0_i32_7 = arith.constant 0 : i32
    %8 = arith.cmpi eq, %arg1, %c0_i32_7 : i32
    %9 = arith.extui %8 : i1 to i32
    %c0_i32_8 = arith.constant 0 : i32
    %10 = arith.cmpi ne, %9, %c0_i32_8 : i32
    scf.if %10 {
      %c0_9 = arith.constant 0 : index
      %c0_10 = arith.constant 0 : index
      %11 = vector.load %arg6[%c0_9, %c0_10] : memref<2x4xf32, #tpu.memory_space<vmem>>, vector<2x4xf32>
      %cst_11 = arith.constant 3.906250e-03 : f32
      %12 = vector.broadcast %cst_11 : f32 to vector<2x4xf32>
      %13 = arith.mulf %11, %12 : vector<2x4xf32>
      %c0_12 = arith.constant 0 : index
      %c0_13 = arith.constant 0 : index
      %14 = vector.load %arg3[%c0_12, %c0_13] : memref<4x128xf32, #tpu.memory_space<vmem>>, vector<4x128xf32>
      %cst_14 = arith.constant dense<0.000000e+00> : vector<2x128xf32>
      %15 = tpu.matmul %13, %14, %cst_14 {dimension_numbers = #tpu.dot_dimension_numbers<[1], [0], [0], [1], [0, 0, 1, 1], [], []>} : vector<2x4xf32>, vector<4x128xf32>, vector<2x128xf32> -> vector<2x128xf32>
      %c0_15 = arith.constant 0 : index
      %c0_16 = arith.constant 0 : index
      %16 = vector.load %arg4[%c0_15, %c0_16] : memref<1x128xf32, #tpu.memory_space<vmem>>, vector<1x128xf32>
      %17 = vector.broadcast %16 : vector<1x128xf32> to vector<2x128xf32>
      %18 = arith.addf %15, %17 : vector<2x128xf32>
      %c0_17 = arith.constant 0 : index
      %c0_18 = arith.constant 0 : index
      %19 = vector.load %arg5[%c0_17, %c0_18] : memref<2x128xf32, #tpu.memory_space<vmem>>, vector<2x128xf32>
      tpu.vector_store %arg5[%c0_17, %c0_18], %18 {strides = array<i32>} : memref<2x128xf32, #tpu.memory_space<vmem>>, vector<2x128xf32>,
    } else {
    }
    return
  }
  func.func @transform_0(%arg0: i32, %arg1: i32) -> (i32, i32, i32) {
    %c0_i32 = arith.constant 0 : i32
    %c0_i32_0 = arith.constant 0 : i32
    return %arg0, %c0_i32, %arg1 : i32, i32, i32
  }
  func.func @transform_1(%arg0: i32, %arg1: i32) -> (i32, i32) {
    %c0_i32 = arith.constant 0 : i32
    %c0_i32_0 = arith.constant 0 : i32
    %c0_i32_1 = arith.constant 0 : i32
    return %c0_i32, %c0_i32_0 : i32, i32
  }
  func.func @transform_2(%arg0: i32, %arg1: i32) -> (i32, i32) {
    %c0_i32 = arith.constant 0 : i32
    %c0_i32_0 = arith.constant 0 : i32
    %c0_i32_1 = arith.constant 0 : i32
    return %c0_i32, %c0_i32_0 : i32, i32
  }
  func.func @transform_3(%arg0: i32, %arg1: i32) -> (i32, i32) {
    %c0_i32 = arith.constant 0 : i32
    %c0_i32_0 = arith.constant 0 : i32
    return %arg0, %c0_i32 : i32, i32
  }
}

</mosaic_0001>

<bundles_post_ra>
// kernel: tpu_custom_call.1
= control target key start
LH: loop header
LB: loop body
LE: loop exit
PB: predicated region body
PF: predicated region fallthrough
CT: control target
= control target key end

     0   :  { %8 = vsyncpa [#allocation4], 0  ;;  %s276_s0 = inlined_call_operand.hbm [shape: f32[2,4,256], index: 0, kind: input, shape index: {}]   ;;  %s277_s1 = inlined_call_operand.hbm [shape: f32[4,128], index: 1, kind: input, shape index: {}]   ;;  %s278_s2 = inlined_call_operand.vmem [shape: f32[1,128], index: 2, kind: input, shape index: {}]   ;;  %s279_s3 = inlined_call_operand.hbm [shape: f32[2,128], index: 3, kind: output, shape index: {}]  }
   0x1   :  { %9 = vsyncpa [#allocation7], 0 }
   0x2   :  { %10 = vsyncpa [#allocation5], 0  ;;  %s15_s14 = sshll.u32 %s276_s0, 4  ;;  %s233_s15 = smov [#allocation3]   ;;  %s16_s14 = int_to_ptr.hbm [resolvable:$true] %s15_s14 }
   0x3   :  { %s17_s16 = sshll.u32 %s233_s15, 4  ;;  %s29_s19 = sshll.u32 %s277_s1, 4  ;;  %s18_s16 = int_to_ptr.vmem [resolvable:$true] %s17_s16  ;;  %s30_s19 = int_to_ptr.hbm [resolvable:$true] %s29_s19 }
   0x4   :  { %s234_s20 = smov 128   ;;  %s235_s21 = smov 8  }
   0x5   :  { %23 = dma.hbm_to_vmem [thread:$0]  %s16_s14, 256, %s18_s16, [#allocation4], %s234_s20, %s234_s20, %s235_s21  }
   0x6   :  { %s236_s22 = smov [#allocation6]  }
   0x7   :  { %s31_s23 = sshll.u32 %s236_s22, 4  ;;  %s32_s23 = int_to_ptr.vmem [resolvable:$true] %s31_s23 }
   0x8   :  { %34 = dma.hbm_to_vmem [thread:$0]  %s30_s19, 64, %s32_s23, [#allocation7]  }
   0x9   :  { %227 = dma.done.wait [#allocation4], 256  }
   0xa   :  { %228 = vsyncadd [#allocation4], 4294967040 }
   0xb   :  { %229 = dma.done.wait [#allocation7], 64  }
   0xc   :  { %230 = vsyncadd [#allocation7], 4294967232  ;;  %v51_v0 = vld [vmem:[#allocation3] sm:$0xff]  ;;  %v52_v1 = vld [vmem:[#allocation3 + $0x8] sm:$0xff]  ;;  %vm67_vm0 = vcmask 1043456   ;;  %vm49_vm1 = vcmask 25600   ;;  %v80_v15 = vlaneseq }
   0xd   :  { %56 = vst [vmem:[#allocation1] ss:$2 sm:$0xff] %v51_v0  ;;  %v237_v12 = vmov 0.0   ;;  %v95_v13 = vld [vmem:[#allocation6] sm:$0xf]  ;;  %vm84_vm2 = vcmask 1041409  }
   0xe   :  { %60 = vst [vmem:[#allocation1 + $0x10] ss:$2 sm:$0xff] %v52_v1  ;;  %146 = vmatpush.msk.msra.mxu0 %vm67_vm0, %v95_v13  ;;  %v81_v16 = vand.u32 127, %v80_v15  ;;  %vm100_vm3 = vcmask 31744   ;;  %v154_v25 = vld [vmem:[%s278_s2] ss:$0 sm:$0xff] }
   0xf   :  { %50 = vst.msk [vmem:[#allocation2] sm:$0x3] %vm49_vm1, %v237_v12  ;;  %s238_s24 = smov [#allocation8]   ;;  %s135_s28 = sshll.u32 %s279_s3, 4  ;;  %s136_s28 = int_to_ptr.hbm [resolvable:$true] %s135_s28 }
  0x10   :  { %s133_s25 = sshll.u32 %s238_s24, 4  ;;  %s134_s25 = int_to_ptr.vmem [resolvable:$true] %s133_s25 }
  0x14   :  { %v57_v2 = vld.sshfl [vmem:[#allocation1] sm:$0xff pattern:$0x75316420]  ;;  %v58_v3 = vld.sshfl [vmem:[#allocation1 + $0x8] sm:$0xff pattern:$0x75316420] }
  0x15   :  { %v68_v4 = vsel %vm67_vm0, %v57_v2, 0.0  ;;  %v69_v5 = vsel %vm67_vm0, %v58_v3, 0.0  ;;  %v61_v7 = vld.sshfl [vmem:[#allocation1 + $0x10] sm:$0xff pattern:$0x75316420] }
  0x16   :  { %v70_v6 = vadd.f32 %v69_v5, %v68_v4  ;;  %v62_v8 = vld.sshfl [vmem:[#allocation1 + $0x18] sm:$0xff pattern:$0x75316420]  ;;  %v73_v9 = vsel %vm67_vm0, %v61_v7, 0.0  ;;  %v53_v19 = vld [vmem:[#allocation2] sm:$0x3] }
  0x17   :  { %v74_v10 = vsel %vm67_vm0, %v62_v8, 0.0 }
  0x18   :  { %71 = vadd.xlane.f32.xlu0 %v70_v6  ;;  %v75_v11 = vadd.f32 %v74_v10, %v73_v9 }
  0x20   :  { %76 = vadd.xlane.f32.xlu0 %v75_v11 }
  0x8b   :  { %v72_v14 = vpop.xlane.xlu0 %71 }
  0x8c   :  { %v82_v18 = vperm.slane %v72_v14, %v81_v16 }
  0x93   :  { %v77_v17 = vpop.xlane.xlu0 %76 }
  0x94   :  { %v83_v20 = vperm.slane %v77_v17, %v81_v16 }
  0x96   :  { %v85_v21 = vsel %vm84_vm2, %v83_v20, %v82_v18 }
  0x97   :  { %v87_v22 = vadd.f32 %v85_v21, %v53_v19 }
  0x99   :  { %89 = vst.msk [vmem:[#allocation2] sm:$0x3] %vm49_vm1, %v87_v22 }
  0xa0   :  { %v93_v23 = vld [vmem:[#allocation2] sm:$0x3] }
  0xa1   :  { %v94_v24 = vmul.f32 0.00390625, %v93_v23 }
  0xa3   :  { %147 = vmatmul.msk.f32.vlgmr.msra.gmra.mxu0 %vm100_vm3, %v94_v24 }
 0x120   :  { %v124_v26 = vpop.f32.mrf.mxu0 }
 0x121   :  { %v125_v27 = vadd.f32 %v154_v25, %v124_v26 }
 0x123   :  { %127 = vst [vmem:[#allocation8] sm:$0x3] %v125_v27 }
 0x124   :  { %138 = dma.vmem_to_hbm [thread:$0]  %s134_s25, 32, %s136_s28, [#allocation5]  }
 0x125   :  { %231 = dma.done.wait [#allocation5], 32  }
 0x126   :  { %232 = vsyncadd [#allocation5], 4294967264 }
 0x127   :  { %143 = vsyncpa [#allocation4], 1 }
 0x128   :  { %144 = vsyncpa [#allocation7], 1 }
 0x129   :  { %145 = vsyncpa [#allocation5], 1 }

</bundles_post_ra>
